<compile_context>
chip_gen: v7x
topology: tpu7x:2x2x1
jax: 0.10.0
libtpu: 0.0.40
codegen_flags: <defaults>
</compile_context>

<pallas_src>
import functools

import jax
import jax.numpy as jnp
from jax.experimental import pallas as pl
from jax.experimental.pallas import tpu as pltpu

CONF_THRES = 0.25
IOU_THRES = 0.45


# ---------------------------------------------------------------------------
# Kernel 1: per-box prep, row layout in, lane-dense packed (8, N) out.
# Packed rows: [x1, y1, x2, y2, area, score, valid, pad]
# ---------------------------------------------------------------------------
def _prep_kernel(xt_ref, packed_ref, *, img_w, img_h, conf_thres):
    xt = xt_ref[...]                                  # (D, TN) f32

    # Scaling/clipping faithfully replicates the torch code (cx,w scale by
    # image_height = original_image.size(1); cy,h by image_width = size(0);
    # x2 clipped at image_width, y2 at image_height) -- intentional, even
    # though it looks like an axis swap.
    cx = xt[0:1, :] * img_h
    cy = xt[1:2, :] * img_w
    w = xt[2:3, :] * img_h
    h = xt[3:4, :] * img_w
    conf = xt[4:5, :]
    cls0 = xt[5:6, :]

    # argmax(classes) == 0  <=>  class-0 score >= max of remaining classes.
    if xt.shape[0] > 6:
        rest_max = jnp.max(xt[6:, :], axis=0, keepdims=True)
        class_ok = cls0 >= rest_max
    else:
        class_ok = cls0 >= cls0                       # single class: all True

    # torch.div(., 2, rounding_mode='trunc'), .to(int) (trunc), then clamp.
    hw = jnp.trunc(w * 0.5)
    hh = jnp.trunc(h * 0.5)
    x1 = jnp.maximum(jnp.trunc(cx - hw), 0.0)
    y1 = jnp.maximum(jnp.trunc(cy - hh), 0.0)
    x2 = jnp.minimum(jnp.trunc(cx + hw), img_w)
    y2 = jnp.minimum(jnp.trunc(cy + hh), img_h)

    # torch: logical_or(w > 0, h > 0)  (OR, exactly as in the original).
    valid = (conf > conf_thres) & class_ok & ((w > 0.0) | (h > 0.0))

    area = (x2 - x1) * (y2 - y1)
    pad = jnp.zeros_like(x1)
    packed_ref[...] = jnp.concatenate(
        [x1, y1, x2, y2, area, conf, jnp.where(valid, 1.0, 0.0), pad], axis=0)


# ---------------------------------------------------------------------------
# Kernel 2: tiled pairwise thresholded-IoU mask.  Row operand arrives in
# column layout (TR, 8), col operand in row layout (8, TC); output block
# (TR, TC) int8 with 1 = "IoU > iou_thres".  Inputs are pre-sorted by score,
# so only the lower triangle (j <= i) is ever consumed; upper blocks are
# zero-filled without the IoU arithmetic.
# ---------------------------------------------------------------------------
def _iou_mask_kernel(pcol_ref, prow_ref, mask_ref, *, iou_thres):
    i = pl.program_id(0)
    j = pl.program_id(1)

    @pl.when(j <= i)
    def _():
        pc = pcol_ref[...]                            # (TR, 8) f32
        pr = prow_ref[...]                            # (8, TC) f32
        x1r, y1r = pc[:, 0:1], pc[:, 1:2]
        x2r, y2r, area_r = pc[:, 2:3], pc[:, 3:4], pc[:, 4:5]
        x1c, y1c = pr[0:1, :], pr[1:2, :]
        x2c, y2c, area_c = pr[2:3, :], pr[3:4, :], pr[4:5, :]

        iw = jnp.maximum(jnp.minimum(x2r, x2c) - jnp.maximum(x1r, x1c), 0.0)
        ih = jnp.maximum(jnp.minimum(y2r, y2c) - jnp.maximum(y1r, y1c), 0.0)
        inter = iw * ih                               # (TR, TC)
        union = area_r + area_c - inter
        # Threshold in f32 (no divide, no approx-recip error at the boundary):
        # IoU > thres  <=>  inter > thres * union   (union >= 0 always).
        suppress = inter > (iou_thres * union)
        mask_ref[...] = jnp.where(suppress, 1, 0).astype(jnp.int8)

    @pl.when(j > i)
    def _():
        mask_ref[...] = jnp.zeros_like(mask_ref)


# ---------------------------------------------------------------------------
# Kernel 3: greedy NMS suppression over score-sorted detections.
# Mask rows are streamed in (TR, N) int8 slabs by the BlockSpec pipeline;
# each slab is cast once to a small f32 scratch for dynamic-sublane row reads.
# The serial loop is bounded by the scalar-prefetched valid-box count.
# keep_sc holds the running kept-vector (0/1) in sorted index space.
# ---------------------------------------------------------------------------
def _nms_kernel(count_ref, mask_ref, keep_ref, rowbuf_ref, keep_sc_ref):
    b = pl.program_id(0)
    tr = mask_ref.shape[0]
    n = mask_ref.shape[1]
    nvalid = count_ref[0]

    @pl.when(b == 0)
    def _():
        keep_sc_ref[...] = jnp.zeros_like(keep_sc_ref)

    start = b * tr

    @pl.when(start < nvalid)
    def _():
        rowbuf_ref[...] = mask_ref[...].astype(jnp.float32)   # one slab cast
        nrows = jnp.minimum(nvalid - start, tr)

        def body(r, carry):
            keep = keep_sc_ref[...]                            # (1, n) 0/1
            row = rowbuf_ref[pl.ds(r, 1), :]                   # (1, n) 0/1
            # Boxes with index >= start+r (incl. self) still have keep == 0,
            # so no explicit prefix/lane masking is needed.
            supp = jnp.max(row * keep, axis=1, keepdims=True)  # (1, 1)
            ok = jnp.where(supp > 0.5, 0.0, 1.0)               # (1, 1)
            t = start + r
            lane = jax.lax.broadcasted_iota(jnp.int32, (1, n), 1)
            keep_sc_ref[...] = jnp.where(lane == t, ok, keep)
            return carry

        jax.lax.fori_loop(0, nrows, body, jnp.int32(0))

    @pl.when(b == pl.num_programs(0) - 1)
    def _():
        keep_ref[...] = keep_sc_ref[...]


# ---------------------------------------------------------------------------
# pallas_call wrappers
# ---------------------------------------------------------------------------
def _pick_tile(n, cap):
    t = min(n, cap)
    while n % t:
        t -= 128
    return t


def _run_prep(xt, *, img_w, img_h, conf_thres, tile):
    d, n = xt.shape
    kern = functools.partial(_prep_kernel, img_w=img_w, img_h=img_h,
                             conf_thres=conf_thres)
    return pl.pallas_call(
        kern,
        out_shape=jax.ShapeDtypeStruct((8, n), jnp.float32),
        grid=(n // tile,),
        in_specs=[pl.BlockSpec((d, tile), lambda i: (0, i))],
        out_specs=pl.BlockSpec((8, tile), lambda i: (0, i)),
        compiler_params=pltpu.CompilerParams(
            dimension_semantics=("parallel",)),
    )(xt)


def _run_iou_mask(packed_col, packed_row, *, iou_thres, tile):
    n = packed_col.shape[0]
    kern = functools.partial(_iou_mask_kernel, iou_thres=iou_thres)
    return pl.pallas_call(
        kern,
        out_shape=jax.ShapeDtypeStruct((n, n), jnp.int8),
        grid=(n // tile, n // tile),
        in_specs=[pl.BlockSpec((tile, 8), lambda i, j: (i, 0)),
                  pl.BlockSpec((8, tile), lambda i, j: (0, j))],
        out_specs=pl.BlockSpec((tile, tile), lambda i, j: (i, j)),
        compiler_params=pltpu.CompilerParams(
            dimension_semantics=("parallel", "parallel")),
    )(packed_col, packed_row)


def _run_nms(count, mask, *, block_rows=128):
    n = mask.shape[0]
    tr = min(block_rows, n)
    grid_spec = pltpu.PrefetchScalarGridSpec(
        num_scalar_prefetch=1,
        grid=(n // tr,),
        in_specs=[pl.BlockSpec((tr, n), lambda b, count: (b, 0))],
        out_specs=pl.BlockSpec((1, n), lambda b, count: (0, 0)),
        scratch_shapes=[pltpu.VMEM((tr, n), jnp.float32),
                        pltpu.VMEM((1, n), jnp.float32)],
    )
    return pl.pallas_call(
        _nms_kernel,
        out_shape=jax.ShapeDtypeStruct((1, n), jnp.float32),
        grid_spec=grid_spec,
        compiler_params=pltpu.CompilerParams(
            dimension_semantics=("arbitrary",)),
    )(count, mask)


# ---------------------------------------------------------------------------
# Public wrapper: JAX equivalent of Yolo_postprocessor.forward.
# Returns (boxes, scores, num_kept): padded to N rows; first num_kept rows
# are the NMS-kept detections in descending score order.
# ---------------------------------------------------------------------------
def yolo_postprocess(x, original_image, conf_thres=CONF_THRES,
                     iou_thres=IOU_THRES):
    x0 = x[0].astype(jnp.float32)                     # (N, D)
    n, _ = x0.shape
    assert n % 128 == 0, "N must be a multiple of 128 (lane width)"
    img_w = float(original_image.shape[0])            # torch: image_width
    img_h = float(original_image.shape[1])            # torch: image_height

    # Layout plumbing only: detections presented row-major-in-D so kernel
    # stores along N are lane-dense.
    xt = jnp.transpose(x0)                            # (D, N)

    prep_tile = _pick_tile(n, 2048)
    packed = _run_prep(xt, img_w=img_w, img_h=img_h, conf_thres=conf_thres,
                       tile=prep_tile)                # (8, N)
    packed_col = jnp.transpose(packed)                # (N, 8), tiny

    scores = packed_col[:, 5]                         # (N,)
    valid = packed_col[:, 6] > 0.5                    # (N,)

    # Sort BEFORE IoU: descending score, invalid boxes last.  IoU and NMS then
    # work entirely in sorted index space (row t at step t, triangle-only).
    masked_scores = jnp.where(valid, scores, jnp.float32(-jnp.inf))
    order = jnp.argsort(-masked_scores).astype(jnp.int32)
    packed_sorted = packed_col[order]                 # (N, 8), small gather
    packed_sorted_row = jnp.transpose(packed_sorted)  # (8, N)

    iou_tile = _pick_tile(n, 1024)
    mask = _run_iou_mask(packed_sorted, packed_sorted_row,
                         iou_thres=iou_thres, tile=iou_tile)  # (N, N) int8

    nvalid = jnp.sum(valid).astype(jnp.int32).reshape(1)
    keep_f = _run_nms(nvalid, mask)                   # (1, N), sorted space
    keep = keep_f[0] > 0.5

    # Pack kept detections first (stable sort keeps descending-score order,
    # matching torchvision.ops.nms output ordering).
    pack_idx = jnp.argsort(jnp.logical_not(keep))
    boxes_out = packed_sorted[:, 0:4][pack_idx]
    scores_out = packed_sorted[:, 5][pack_idx]
    num_kept = jnp.sum(keep.astype(jnp.int32))
    return boxes_out, scores_out, num_kept


if __name__ == "__main__":
    key = jax.random.PRNGKey(0)
    k_xy, k_wh, k_conf, k_cls = jax.random.split(key, 4)

    N, NUM_CLASSES = 128, 11
    D = 5 + NUM_CLASSES

    xy = jax.random.uniform(k_xy, (1, N, 2), dtype=jnp.float32)      # cx, cy
    wh = jax.random.uniform(k_wh, (1, N, 2), dtype=jnp.float32)      # w, h
    conf = jax.random.uniform(k_conf, (1, N, 1), dtype=jnp.float32)  # objectness
    cls = jax.random.uniform(k_cls, (1, N, NUM_CLASSES), dtype=jnp.float32)
    x = jnp.concatenate([xy, wh, conf, cls], axis=-1)                # (1, N, D)

    original_image = jnp.zeros((64, 48, 3), dtype=jnp.uint8)         # W=64, H=48

    boxes, scores, num_kept = yolo_postprocess(x, original_image)
    jax.block_until_ready((boxes, scores, num_kept))
    assert boxes.shape == (N, 4) and boxes.dtype == jnp.float32
    assert scores.shape == (N,) and scores.dtype == jnp.float32
    assert int(num_kept) >= 0
    print("KERNEL_OK")
</pallas_src>

<mosaic_0001>
module attributes {stable_mosaic.version = 11 : i64} {
  func.func @_prep_kernel(%arg0: i32, %arg1: memref<16x128xf32, #tpu.memory_space<vmem>>, %arg2: memref<8x128xf32, #tpu.memory_space<vmem>>) attributes {dimension_semantics = [#tpu.dimension_semantics<parallel>], iteration_bounds = array<i64: 1>, scalar_prefetch = 0 : i64, scratch_operands = 0 : i64, tpu.core_type = #tpu.core_type<tc>, window_params = [{transform_indices = @transform_0, window_bounds = array<i64: 16, 128>}, {transform_indices = @transform_1, window_bounds = array<i64: 8, 128>}]} {
    %c0 = arith.constant 0 : index
    %c0_0 = arith.constant 0 : index
    %0 = vector.load %arg1[%c0, %c0_0] : memref<16x128xf32, #tpu.memory_space<vmem>>, vector<16x128xf32>
    %1 = vector.extract_strided_slice %0 {offsets = [0, 0], sizes = [1, 128], strides = [1, 1]} : vector<16x128xf32> to vector<1x128xf32>
    %cst = arith.constant 4.800000e+01 : f32
    %2 = vector.broadcast %cst : f32 to vector<1x128xf32>
    %3 = arith.mulf %1, %2 : vector<1x128xf32>
    %4 = vector.extract_strided_slice %0 {offsets = [1, 0], sizes = [1, 128], strides = [1, 1]} : vector<16x128xf32> to vector<1x128xf32>
    %cst_1 = arith.constant 6.400000e+01 : f32
    %5 = vector.broadcast %cst_1 : f32 to vector<1x128xf32>
    %6 = arith.mulf %4, %5 : vector<1x128xf32>
    %7 = vector.extract_strided_slice %0 {offsets = [2, 0], sizes = [1, 128], strides = [1, 1]} : vector<16x128xf32> to vector<1x128xf32>
    %cst_2 = arith.constant 4.800000e+01 : f32
    %8 = vector.broadcast %cst_2 : f32 to vector<1x128xf32>
    %9 = arith.mulf %7, %8 : vector<1x128xf32>
    %10 = vector.extract_strided_slice %0 {offsets = [3, 0], sizes = [1, 128], strides = [1, 1]} : vector<16x128xf32> to vector<1x128xf32>
    %cst_3 = arith.constant 6.400000e+01 : f32
    %11 = vector.broadcast %cst_3 : f32 to vector<1x128xf32>
    %12 = arith.mulf %10, %11 : vector<1x128xf32>
    %13 = vector.extract_strided_slice %0 {offsets = [4, 0], sizes = [1, 128], strides = [1, 1]} : vector<16x128xf32> to vector<1x128xf32>
    %14 = vector.extract_strided_slice %0 {offsets = [5, 0], sizes = [1, 128], strides = [1, 1]} : vector<16x128xf32> to vector<1x128xf32>
    %15 = vector.extract_strided_slice %0 {offsets = [6, 0], sizes = [10, 128], strides = [1, 1]} : vector<16x128xf32> to vector<10x128xf32>
    %cst_4 = arith.constant dense<0xFF800000> : vector<128xf32>
    %16 = vector.multi_reduction <maximumf>, %15, %cst_4 [0] : vector<10x128xf32> to vector<128xf32>
    %17 = vector.shape_cast %16 : vector<128xf32> to vector<1x128xf32>
    %18 = arith.cmpf oge, %14, %17 : vector<1x128xf32>
    %cst_5 = arith.constant 5.000000e-01 : f32
    %19 = vector.broadcast %cst_5 : f32 to vector<1x128xf32>
    %20 = arith.mulf %9, %19 : vector<1x128xf32>
    %cst_6 = arith.constant 0.000000e+00 : f32
    %21 = vector.broadcast %cst_6 : f32 to vector<1x128xf32>
    %22 = arith.cmpf olt, %20, %21 : vector<1x128xf32>
    %23 = math.ceil %20 : vector<1x128xf32>
    %24 = math.floor %20 : vector<1x128xf32>
    %25 = arith.select %22, %23, %24 : vector<1x128xi1>, vector<1x128xf32>
    %cst_7 = arith.constant 5.000000e-01 : f32
    %26 = vector.broadcast %cst_7 : f32 to vector<1x128xf32>
    %27 = arith.mulf %12, %26 : vector<1x128xf32>
    %cst_8 = arith.constant 0.000000e+00 : f32
    %28 = vector.broadcast %cst_8 : f32 to vector<1x128xf32>
    %29 = arith.cmpf olt, %27, %28 : vector<1x128xf32>
    %30 = math.ceil %27 : vector<1x128xf32>
    %31 = math.floor %27 : vector<1x128xf32>
    %32 = arith.select %29, %30, %31 : vector<1x128xi1>, vector<1x128xf32>
    %33 = arith.subf %3, %25 : vector<1x128xf32>
    %cst_9 = arith.constant 0.000000e+00 : f32
    %34 = vector.broadcast %cst_9 : f32 to vector<1x128xf32>
    %35 = arith.cmpf olt, %33, %34 : vector<1x128xf32>
    %36 = math.ceil %33 : vector<1x128xf32>
    %37 = math.floor %33 : vector<1x128xf32>
    %38 = arith.select %35, %36, %37 : vector<1x128xi1>, vector<1x128xf32>
    %cst_10 = arith.constant 0.000000e+00 : f32
    %39 = vector.broadcast %cst_10 : f32 to vector<1x128xf32>
    %40 = arith.maximumf %38, %39 : vector<1x128xf32>
    %41 = arith.subf %6, %32 : vector<1x128xf32>
    %cst_11 = arith.constant 0.000000e+00 : f32
    %42 = vector.broadcast %cst_11 : f32 to vector<1x128xf32>
    %43 = arith.cmpf olt, %41, %42 : vector<1x128xf32>
    %44 = math.ceil %41 : vector<1x128xf32>
    %45 = math.floor %41 : vector<1x128xf32>
    %46 = arith.select %43, %44, %45 : vector<1x128xi1>, vector<1x128xf32>
    %cst_12 = arith.constant 0.000000e+00 : f32
    %47 = vector.broadcast %cst_12 : f32 to vector<1x128xf32>
    %48 = arith.maximumf %46, %47 : vector<1x128xf32>
    %49 = arith.addf %3, %25 : vector<1x128xf32>
    %cst_13 = arith.constant 0.000000e+00 : f32
    %50 = vector.broadcast %cst_13 : f32 to vector<1x128xf32>
    %51 = arith.cmpf olt, %49, %50 : vector<1x128xf32>
    %52 = math.ceil %49 : vector<1x128xf32>
    %53 = math.floor %49 : vector<1x128xf32>
    %54 = arith.select %51, %52, %53 : vector<1x128xi1>, vector<1x128xf32>
    %cst_14 = arith.constant 6.400000e+01 : f32
    %55 = vector.broadcast %cst_14 : f32 to vector<1x128xf32>
    %56 = arith.minimumf %54, %55 : vector<1x128xf32>
    %57 = arith.addf %6, %32 : vector<1x128xf32>
    %cst_15 = arith.constant 0.000000e+00 : f32
    %58 = vector.broadcast %cst_15 : f32 to vector<1x128xf32>
    %59 = arith.cmpf olt, %57, %58 : vector<1x128xf32>
    %60 = math.ceil %57 : vector<1x128xf32>
    %61 = math.floor %57 : vector<1x128xf32>
    %62 = arith.select %59, %60, %61 : vector<1x128xi1>, vector<1x128xf32>
    %cst_16 = arith.constant 4.800000e+01 : f32
    %63 = vector.broadcast %cst_16 : f32 to vector<1x128xf32>
    %64 = arith.minimumf %62, %63 : vector<1x128xf32>
    %cst_17 = arith.constant 2.500000e-01 : f32
    %65 = vector.broadcast %cst_17 : f32 to vector<1x128xf32>
    %66 = arith.cmpf ogt, %13, %65 : vector<1x128xf32>
    %67 = arith.andi %66, %18 : vector<1x128xi1>
    %cst_18 = arith.constant 0.000000e+00 : f32
    %68 = vector.broadcast %cst_18 : f32 to vector<1x128xf32>
    %69 = arith.cmpf ogt, %9, %68 : vector<1x128xf32>
    %cst_19 = arith.constant 0.000000e+00 : f32
    %70 = vector.broadcast %cst_19 : f32 to vector<1x128xf32>
    %71 = arith.cmpf ogt, %12, %70 : vector<1x128xf32>
    %72 = arith.ori %69, %71 : vector<1x128xi1>
    %73 = arith.andi %67, %72 : vector<1x128xi1>
    %74 = arith.subf %56, %40 : vector<1x128xf32>
    %75 = arith.subf %64, %48 : vector<1x128xf32>
    %76 = arith.mulf %74, %75 : vector<1x128xf32>
    %cst_20 = arith.constant 0.000000e+00 : f32
    %77 = vector.broadcast %cst_20 : f32 to vector<1x128xf32>
    %cst_21 = arith.constant 1.000000e+00 : f32
    %cst_22 = arith.constant 0.000000e+00 : f32
    %78 = vector.broadcast %cst_21 : f32 to vector<1x128xf32>
    %79 = vector.broadcast %cst_22 : f32 to vector<1x128xf32>
    %80 = arith.select %73, %78, %79 : vector<1x128xi1>, vector<1x128xf32>
    %81 = tpu.concatenate %40, %48, %56, %64, %76, %13, %80, %77 in 0 : vector<1x128xf32>, vector<1x128xf32>, vector<1x128xf32>, vector<1x128xf32>, vector<1x128xf32>, vector<1x128xf32>, vector<1x128xf32>, vector<1x128xf32> -> vector<8x128xf32>
    %c0_23 = arith.constant 0 : index
    %c0_24 = arith.constant 0 : index
    %82 = vector.load %arg2[%c0_23, %c0_24] : memref<8x128xf32, #tpu.memory_space<vmem>>, vector<8x128xf32>
    tpu.vector_store %arg2[%c0_23, %c0_24], %81 {strides = array<i32>} : memref<8x128xf32, #tpu.memory_space<vmem>>, vector<8x128xf32>,
    return
  }
  func.func @transform_0(%arg0: i32) -> (i32, i32) {
    %c0_i32 = arith.constant 0 : i32
    %c0_i32_0 = arith.constant 0 : i32
    return %c0_i32, %arg0 : i32, i32
  }
  func.func @transform_1(%arg0: i32) -> (i32, i32) {
    %c0_i32 = arith.constant 0 : i32
    %c0_i32_0 = arith.constant 0 : i32
    return %c0_i32, %arg0 : i32, i32
  }
}

</mosaic_0001>

<bundles_post_ra>
// kernel: tpu_custom_call.1
= control target key start
LH: loop header
LB: loop body
LE: loop exit
PB: predicated region body
PF: predicated region fallthrough
CT: control target
= control target key end

     0   :  { %6 = vsyncpa [#allocation3], 0  ;;  %s247_s0 = inlined_call_operand.hbm [shape: f32[16,128], index: 0, kind: input, shape index: {}]   ;;  %s248_s1 = inlined_call_operand.hbm [shape: f32[8,128], index: 1, kind: output, shape index: {}]  }
   0x1   :  { %7 = vsyncpa [#allocation4], 0  ;;  %s198_s6 = smov [#allocation2]   ;;  %s150_s10 = scalar_lea.hbm %s247_s0, 256 }
   0x2   :  { %s13_s7 = sshll.u32 %s198_s6, 4  ;;  %p151_p0 = scmp.ne.s32.totalorder %s247_s0, %s150_s10  ;;  %s14_s7 = int_to_ptr.vmem [resolvable:$true] %s13_s7 }
   0x3   :  { %p154_p1 = scmp.lt.u32.totalorder %s150_s10, %s247_s0 }
   0x5   :  { %p156_p2 = pnand %p154_p1, %p151_p0 }
   0x7   :  { %159 = shalt.err (!%p156_p2)
}
   0x8   :  { %s160_s15 = scalar_lea.vmem %s14_s7, 256  ;;  %p165_p4 = scmp.lt.s32.totalorder %s14_s7, %s14_s7 }
   0x9   :  { %p161_p3 = scmp.ne.s32.totalorder %s14_s7, %s160_s15  ;;  %p166_p5 = scmp.lt.s32.totalorder %s160_s15, %s160_s15 }
   0xb   :  { %p167_p6 = por %p166_p5, %p165_p4 }
   0xd   :  { %p168_p7 = pnand %p167_p6, %p161_p3 }
   0xf   :  { %171 = shalt.err (!%p168_p7)
}
  0x10   :  { %s199_s16 = smov 128   ;;  %s200_s17 = smov 8  }
  0x11   :  { %19 = dma.hbm_to_vmem [thread:$0]  %s247_s0, 256, %s14_s7, [#allocation3], %s199_s16, %s199_s16, %s200_s17  }
  0x12   :  { %194 = dma.done.wait [#allocation3], 256  }
  0x13   :  { %195 = vsyncadd [#allocation3], 4294967040  ;;  %vm27_vm0 = vcmask 1047558   ;;  %v226_v0 = vld [vmem:[#allocation2] sm:$0xff]  ;;  %v24_v1 = vld [vmem:[#allocation2 + $0x8] sm:$0xff]  ;;  %v201_v9 = vmov 0  }
  0x14   :  { %v25_v2 = vmul.f32 48.0, %v226_v0  ;;  %v26_v3 = vmul.f32 64.0, %v226_v0  ;;  %v28_v4 = vsel %vm27_vm0, %v226_v0, -inf  ;;  %vm114_vm12 = vcmask 1040384   ;;  %s203_s0 = smov [#allocation5]  }
  0x15   :  { %v29_v5 = vmax.f32 %v28_v4, %v24_v1  ;;  %vm77_vm13 = vcmp.gt.f32.partialorder %v226_v0, 0.25  ;;  %vm116_vm0 = vcmask 1041408   ;;  %v202_v56 = vmov 0.0   ;;  %s135_s20 = sshll.u32 %s203_s0, 4  ;;  %s136_s20 = int_to_ptr.vmem [resolvable:$true] %s135_s20 }
  0x16   :  { %v37_v6 = vmul.f32 0.5, %v25_v2  ;;  %v42_v7 = vmul.f32 0.5, %v26_v3  ;;  %vm83_vm1 = vcmp.gt.f32.partialorder %v26_v3, 0.0  ;;  %vm82_vm2 = vcmp.gt.f32.partialorder %v25_v2, 0.0  ;;  %s172_s21 = scalar_lea.vmem %s136_s20, 128  ;;  %p177_p9 = scmp.lt.s32.totalorder %s136_s20, %s136_s20 }
  0x17   :  { %v30_v8 = vrot.slane %v29_v5, 4  ;;  %v84_v10 = vsel %vm83_vm1, 1, %v201_v9  ;;  %v109_v59 = vrot.slane %v226_v0, 7  ;;  %p173_p8 = scmp.ne.s32.totalorder %s136_s20, %s172_s21  ;;  %p178_p10 = scmp.lt.s32.totalorder %s172_s21, %s172_s21 }
  0x18   :  { %vm38_vm3 = vcmp.lt.f32.partialorder %v37_v6, 0.0  ;;  %v39_v11 = vceil.f32 %v37_v6  ;;  %v40_v12 = vfloor.f32 %v37_v6  ;;  %vm43_vm4 = vcmp.lt.f32.partialorder %v42_v7, 0.0 }
  0x19   :  { %v31_v13 = vmax.f32 %v29_v5, %v30_v8  ;;  %v44_v14 = vceil.f32 %v42_v7  ;;  %v45_v15 = vfloor.f32 %v42_v7  ;;  %v85_v16 = vrot.slane %v84_v10, 1  ;;  %p179_p11 = por %p178_p10, %p177_p9 }
  0x1a   :  { %v41_v17 = vsel %vm38_vm3, %v39_v11, %v40_v12  ;;  %vm118_vm3 = vcmask 1042432  }
  0x1b   :  { %v32_v18 = vrot.slane %v31_v13, 2  ;;  %v46_v19 = vsel %vm43_vm4, %v44_v14, %v45_v15  ;;  %v48_v20 = vrot.slane %v41_v17, 2  ;;  %vm86_vm5 = vcmp.ne.s32.totalorder %v85_v16, 0  ;;  %p180_p12 = pnand %p179_p11, %p173_p8 }
  0x1c   :  { %v57_v21 = vrot.slane %v46_v19, 2  ;;  %vm87_vm6 = vmor %vm82_vm2, %vm86_vm5  ;;  %vm120_vm4 = vcmask 1043456   ;;  %vm122_vm5 = vcmask 1044480  }
  0x1d   :  { %v33_v22 = vmax.f32 %v31_v13, %v32_v18  ;;  %v50_v23 = vsub.f32 %v25_v2, %v48_v20  ;;  %v65_v24 = vadd.f32 %v48_v20, %v25_v2  ;;  %v88_v27 = vsel %vm87_vm6, 1, %v201_v9 }
  0x1e   :  { %v59_v25 = vsub.f32 %v26_v3, %v57_v21  ;;  %v71_v26 = vadd.f32 %v57_v21, %v26_v3  ;;  %v89_v39 = vrot.slane %v88_v27, 6  ;;  %vm124_vm6 = vcmask 1045504  }
  0x1f   :  { %v34_v28 = vrot.slane %v33_v22, 1  ;;  %vm51_vm7 = vcmp.lt.f32.partialorder %v50_v23, 0.0  ;;  %v52_v29 = vceil.f32 %v50_v23  ;;  %v53_v30 = vfloor.f32 %v50_v23 }
  0x20   :  { %vm60_vm8 = vcmp.lt.f32.partialorder %v59_v25, 0.0  ;;  %v61_v31 = vceil.f32 %v59_v25  ;;  %v62_v32 = vfloor.f32 %v59_v25  ;;  %vm66_vm9 = vcmp.lt.f32.partialorder %v65_v24, 0.0 }
  0x21   :  { %v35_v33 = vmax.f32 %v33_v22, %v34_v28  ;;  %v54_v34 = vsel %vm51_vm7, %v52_v29, %v53_v30  ;;  %v67_v35 = vceil.f32 %v65_v24  ;;  %v68_v36 = vfloor.f32 %v65_v24 }
  0x22   :  { %v63_v37 = vsel %vm60_vm8, %v61_v31, %v62_v32  ;;  %vm72_vm10 = vcmp.lt.f32.partialorder %v71_v26, 0.0  ;;  %v73_v38 = vceil.f32 %v71_v26  ;;  %v74_v41 = vfloor.f32 %v71_v26 }
  0x23   :  { %vm36_vm11 = vcmp.ge.f32.partialorder %v226_v0, %v35_v33  ;;  %v69_v40 = vsel %vm66_vm9, %v67_v35, %v68_v36  ;;  %v55_v42 = vmax.f32 %v54_v34, 0.0  ;;  %v64_v43 = vmax.f32 %v63_v37, 0.0 }
  0x24   :  { %v70_v44 = vmin.f32 %v69_v40, 64.0  ;;  %v78_v45 = vsel %vm36_vm11, 1, %v201_v9  ;;  %v75_v46 = vsel %vm72_vm10, %v73_v38, %v74_v41  ;;  %vm90_vm14 = vcmp.ne.s32.totalorder %v89_v39, 0 }
  0x25   :  { %v79_v47 = vrot.slane %v78_v45, 1  ;;  %v76_v48 = vmin.f32 %v75_v46, 48.0  ;;  %v115_v50 = vsel %vm114_vm12, %v55_v42, %v64_v43  ;;  %vm126_vm7 = vcmask 1046528  }
  0x26   :  { %v100_v49 = vrot.slane %v70_v44, 6  ;;  %v92_v51 = vsub.f32 %v70_v44, %v55_v42 }
  0x27   :  { %vm80_vm15 = vcmp.ne.s32.totalorder %v79_v47, 0  ;;  %v93_v52 = vsub.f32 %v76_v48, %v64_v43  ;;  %v103_v53 = vrot.slane %v76_v48, 6 }
  0x28   :  { %vm81_vm1 = vmand %vm77_vm13, %vm80_vm15  ;;  %v117_v55 = vsel %vm116_vm0, %v115_v50, %v100_v49 }
  0x29   :  { %vm91_vm2 = vmand %vm81_vm1, %vm90_vm14  ;;  %v95_v54 = vrot.slane %v93_v52, 1  ;;  %v119_v60 = vsel %vm118_vm3, %v117_v55, %v103_v53 }
  0x2a   :  { %v98_v57 = vsel %vm91_vm2, 1.0, %v202_v56 }
  0x2b   :  { %v97_v58 = vmul.f32 %v95_v54, %v92_v51  ;;  %v112_v62 = vrot.slane %v98_v57, 6 }
  0x2d   :  { %v106_v61 = vrot.slane %v97_v58, 4 }
  0x2f   :  { %v121_v63 = vsel %vm120_vm4, %v119_v60, %v106_v61 }
  0x30   :  { %v123_v1 = vsel %vm122_vm5, %v121_v63, %v109_v59 }
  0x31   :  { %v125_v2 = vsel %vm124_vm6, %v123_v1, %v112_v62 }
  0x32   :  { %v127_v3 = vsel %vm126_vm7, %v125_v2, 0.0 }
  0x33   :  { %128 = vst [vmem:[#allocation5] sm:$0xff] %v127_v3 }
  0x34   :  { %183 = shalt.err (!%p180_p12)
}
  0x35   :  { %s184_s24 = scalar_lea.hbm %s248_s1, 128 }
  0x36   :  { %p185_p13 = scmp.ne.s32.totalorder %s248_s1, %s184_s24  ;;  %p188_p0 = scmp.lt.u32.totalorder %s184_s24, %s248_s1 }
  0x38   :  { %p190_p1 = pnand %p188_p0, %p185_p13 }
  0x3a   :  { %193 = shalt.err (!%p190_p1)
}
  0x3b   :  { %138 = dma.vmem_to_hbm [thread:$0]  %s136_s20, 128, %s248_s1, [#allocation4]  }
  0x3c   :  { %196 = dma.done.wait [#allocation4], 128  }
  0x3d   :  { %197 = vsyncadd [#allocation4], 4294967168 }
  0x3e   :  { %142 = vsyncpa [#allocation3], 1 }
  0x3f   :  { %143 = vsyncpa [#allocation4], 1 }

</bundles_post_ra>
